<compile_context>
chip_gen: v7x
topology: tpu7x:2x2x1
jax: 0.10.0
libtpu: 0.0.40
codegen_flags: <defaults>
</compile_context>

<pallas_src>
import math
from functools import partial

import jax
import jax.numpy as jnp
from jax.experimental import pallas as pl
from jax.experimental.pallas import tpu as pltpu


def _pick_tile(n, target):
    """Largest multiple-of-8 divisor of n that is <= target (else n itself)."""
    best = None
    for t in range(8, min(n, target) + 1, 8):
        if n % t == 0:
            best = t
    return best if best is not None else n


# ---------------------------------------------------------------------------
# Kernel 1: per-head QKV projection -> (b, n_heads, T, h_prim) Q, K, V.
# ---------------------------------------------------------------------------
def _qkv_proj_kernel(x_ref, w_ref, q_ref, k_ref, v_ref, *, h_prim):
    n = pl.program_id(2)                 # head index (innermost grid axis)
    x = x_ref[0]                         # (tt, h), kept in input dtype
    w = w_ref[n]                         # (h, 3*h_prim), resident stacked weights
    qkv = jnp.dot(x, w, preferred_element_type=jnp.float32)   # (tt, 3*h_prim)
    q_ref[0, 0] = qkv[:, :h_prim].astype(q_ref.dtype)
    k_ref[0, 0] = qkv[:, h_prim:2 * h_prim].astype(k_ref.dtype)
    v_ref[0, 0] = qkv[:, 2 * h_prim:].astype(v_ref.dtype)


# ---------------------------------------------------------------------------
# Kernel 2: flash attention (online softmax) + fused output projection.
# ---------------------------------------------------------------------------
def _flash_attn_kernel(q_ref, k_ref, v_ref, wo_ref, o_ref,
                       m_sc, l_sc, acc_sc, *, n_heads):
    ki = pl.program_id(2)

    @pl.when(ki == 0)
    def _init():
        m_sc[...] = jnp.full_like(m_sc, -jnp.inf)
        l_sc[...] = jnp.zeros_like(l_sc)
        acc_sc[...] = jnp.zeros_like(acc_sc)

    q = q_ref[0]                         # (nh, tq, hp), already 1/sqrt(hp)-scaled
    k = k_ref[0]                         # (nh, tk, hp)
    v = v_ref[0]                         # (nh, tk, hp)

    # Heads batched in one leading-batch contraction (no k.T, no head loop).
    s = jnp.einsum("nqd,nkd->nqk", q, k,
                   preferred_element_type=jnp.float32)          # (nh, tq, tk)

    m_prev = m_sc[...]
    m_new = jnp.maximum(m_prev, jnp.max(s, axis=-1, keepdims=True))
    alpha = jnp.exp(m_prev - m_new)
    p = jnp.exp(s - m_new)
    l_sc[...] = alpha * l_sc[...] + jnp.sum(p, axis=-1, keepdims=True)
    acc_sc[...] = alpha * acc_sc[...] + jnp.einsum(
        "nqk,nkd->nqd", p.astype(v.dtype), v,
        preferred_element_type=jnp.float32)
    m_sc[...] = m_new

    @pl.when(ki == pl.num_programs(2) - 1)
    def _finalize():
        # 1/l on the EUP (approx reciprocal), folded into AV once.
        av = acc_sc[...] * pl.reciprocal(l_sc[...], approx=True)  # (nh, tq, hp)
        av = av.astype(wo_ref.dtype)
        # Fused output projection; the short static head loop runs only in the
        # epilogue (once per q tile) and accumulates into one f32 tile, then a
        # single lane-dense (tq, h) store.
        out = jnp.dot(av[0], wo_ref[0], preferred_element_type=jnp.float32)
        for nh_i in range(1, n_heads):
            out = out + jnp.dot(av[nh_i], wo_ref[nh_i],
                                preferred_element_type=jnp.float32)
        o_ref[0] = out.astype(o_ref.dtype)


# ---------------------------------------------------------------------------
# Weight preparation (do once, outside the per-call hot path).
# ---------------------------------------------------------------------------
def prepare_weights(w_qkv, w_o, *, n_heads, h_prim):
    """Rearrange PyTorch nn.Linear weights for the kernels.

    w_qkv: (3*h_prim*n_heads, h)  -- nn.Linear(h, 3*h_prim*n_heads).weight
    w_o:   (h, h_prim*n_heads)    -- nn.Linear(h_prim*n_heads, h).weight
    Returns:
      w_qkv_heads: (n_heads, h, 3*h_prim), Q columns pre-scaled by 1/sqrt(hp)
      w_o_heads:   (n_heads, h_prim, h)
    """
    h = w_qkv.shape[1]
    w3 = w_qkv.reshape(n_heads, 3, h_prim, h)
    scale = jnp.array([1.0 / math.sqrt(h_prim), 1.0, 1.0], dtype=w_qkv.dtype)
    w3 = w3 * scale[None, :, None, None]
    w_qkv_heads = jnp.transpose(w3.reshape(n_heads, 3 * h_prim, h), (0, 2, 1))
    w_o_heads = w_o.T.reshape(n_heads, h_prim, h)
    return w_qkv_heads, w_o_heads


@partial(jax.jit,
         static_argnames=("n_heads", "h_prim", "q_block", "kv_block",
                          "proj_block"))
def multi_head_attention(x, w_qkv_heads, w_o_heads, *, n_heads, h_prim,
                         q_block=256, kv_block=256, proj_block=256):
    """x: (b, T, h); weights from prepare_weights()."""
    b, T, h = x.shape
    hp = h_prim
    dtype = x.dtype
    tt = _pick_tile(T, proj_block)
    tq = _pick_tile(T, q_block)
    tk = _pick_tile(T, kv_block)
    itemsize = x.dtype.itemsize

    # ---- Kernel 1: QKV projection -> (b, n_heads, T, h_prim) each ----
    qkv_shape = jax.ShapeDtypeStruct((b, n_heads, T, hp), dtype)
    proj_cost = pl.CostEstimate(
        flops=2 * b * T * h * 3 * n_heads * hp,
        transcendentals=0,
        bytes_accessed=(b * T * h + n_heads * h * 3 * hp
                        + 3 * b * n_heads * T * hp) * itemsize,
    )
    q, k, v = pl.pallas_call(
        partial(_qkv_proj_kernel, h_prim=hp),
        out_shape=(qkv_shape, qkv_shape, qkv_shape),
        grid_spec=pltpu.PrefetchScalarGridSpec(
            num_scalar_prefetch=0,
            grid=(b, T // tt, n_heads),
            in_specs=[
                # x tile: index constant across the innermost head axis, so it
                # is fetched once per (batch, tile).
                pl.BlockSpec((1, tt, h), lambda bi, ti, ni: (bi, ti, 0)),
                # Stacked per-head weights: resident in VMEM for the whole grid.
                pl.BlockSpec((n_heads, h, 3 * hp), lambda bi, ti, ni: (0, 0, 0)),
            ],
            out_specs=[
                pl.BlockSpec((1, 1, tt, hp), lambda bi, ti, ni: (bi, ni, ti, 0)),
                pl.BlockSpec((1, 1, tt, hp), lambda bi, ti, ni: (bi, ni, ti, 0)),
                pl.BlockSpec((1, 1, tt, hp), lambda bi, ti, ni: (bi, ni, ti, 0)),
            ],
        ),
        compiler_params=pltpu.CompilerParams(
            dimension_semantics=("parallel", "parallel", "arbitrary"),
            vmem_limit_bytes=32 * 1024 * 1024,
        ),
        cost_estimate=proj_cost,
    )(x, w_qkv_heads)

    # ---- Kernel 2: flash attention + fused output projection ----
    attn_cost = pl.CostEstimate(
        flops=4 * b * n_heads * T * T * hp + 2 * b * T * n_heads * hp * h,
        transcendentals=b * n_heads * T * T,
        bytes_accessed=(3 * b * n_heads * T * hp + n_heads * hp * h
                        + b * T * h) * itemsize,
    )
    out = pl.pallas_call(
        partial(_flash_attn_kernel, n_heads=n_heads),
        out_shape=jax.ShapeDtypeStruct((b, T, h), dtype),
        grid_spec=pltpu.PrefetchScalarGridSpec(
            num_scalar_prefetch=0,
            grid=(b, T // tq, T // tk),
            in_specs=[
                pl.BlockSpec((1, n_heads, tq, hp),
                             lambda bi, qi, ki: (bi, 0, qi, 0)),
                pl.BlockSpec((1, n_heads, tk, hp),
                             lambda bi, qi, ki: (bi, 0, ki, 0)),
                pl.BlockSpec((1, n_heads, tk, hp),
                             lambda bi, qi, ki: (bi, 0, ki, 0)),
                # Output-projection weights resident for the whole grid.
                pl.BlockSpec((n_heads, hp, h), lambda bi, qi, ki: (0, 0, 0)),
            ],
            out_specs=pl.BlockSpec((1, tq, h), lambda bi, qi, ki: (bi, qi, 0)),
            scratch_shapes=[
                pltpu.VMEM((n_heads, tq, 1), jnp.float32),   # running max m
                pltpu.VMEM((n_heads, tq, 1), jnp.float32),   # running sum l
                pltpu.VMEM((n_heads, tq, hp), jnp.float32),  # unnormalized acc
            ],
        ),
        compiler_params=pltpu.CompilerParams(
            dimension_semantics=("parallel", "parallel", "arbitrary"),
            vmem_limit_bytes=32 * 1024 * 1024,
        ),
        cost_estimate=attn_cost,
    )(q, k, v, w_o_heads)
    return out


def _reference(x, w_qkv, w_o, *, n_heads, h_prim):
    b, T, h = x.shape
    qkv = jnp.einsum("bth,oh->bto", x, w_qkv)                       # (b,T,3*hp*nh)
    qkv = qkv.reshape(b, T, n_heads, 3 * h_prim).transpose(0, 2, 1, 3)
    q, k, v = jnp.split(qkv, 3, axis=-1)                            # (b,nh,T,hp)
    s = jnp.einsum("bntd,bnsd->bnts", q, k) / math.sqrt(h_prim)
    p = jax.nn.softmax(s, axis=-1)
    av = jnp.einsum("bnts,bnsd->bntd", p, v)                        # (b,nh,T,hp)
    av = av.transpose(0, 2, 1, 3).reshape(b, T, n_heads * h_prim)
    return jnp.einsum("btd,hd->bth", av, w_o)


if __name__ == "__main__":
    # Small shapes consistent with the module's forward.
    b, T = 2, 16
    h, h_prim, n_heads = 32, 8, 2

    key = jax.random.PRNGKey(0)
    kx, kq, ko = jax.random.split(key, 3)
    x = jax.random.normal(kx, (b, T, h), dtype=jnp.float32)
    # Deterministic parameter init (same shapes as nn.Linear weights).
    w_qkv = jax.random.normal(kq, (3 * h_prim * n_heads, h),
                              dtype=jnp.float32) * 0.05
    w_o = jax.random.normal(ko, (h, h_prim * n_heads), dtype=jnp.float32) * 0.05

    # One-time weight rearrangement, kept out of the per-call hot path.
    w_qkv_heads, w_o_heads = prepare_weights(w_qkv, w_o,
                                             n_heads=n_heads, h_prim=h_prim)

    # Small q/kv blocks so the online-softmax accumulation across multiple kv
    # steps is exercised even at this tiny sequence length.
    out = multi_head_attention(x, w_qkv_heads, w_o_heads,
                               n_heads=n_heads, h_prim=h_prim,
                               q_block=8, kv_block=8, proj_block=8)
    out = jax.block_until_ready(out)

    ref = _reference(x, w_qkv, w_o, n_heads=n_heads, h_prim=h_prim)
    assert out.shape == (b, T, h)
    assert jnp.allclose(out, ref, atol=2e-3, rtol=2e-2), (
        "mismatch vs reference: max abs err "
        f"{float(jnp.max(jnp.abs(out - ref))):.3e}")

    print("KERNEL_OK")
</pallas_src>

<mosaic_0001>
module attributes {stable_mosaic.version = 11 : i64} {
  func.func @_flash_attn_kernel(%arg0: i32, %arg1: i32, %arg2: i32, %arg3: memref<1x2x8x8xf32, #tpu.memory_space<vmem>>, %arg4: memref<1x2x8x8xf32, #tpu.memory_space<vmem>>, %arg5: memref<1x2x8x8xf32, #tpu.memory_space<vmem>>, %arg6: memref<2x8x32xf32, #tpu.memory_space<vmem>>, %arg7: memref<1x8x32xf32, #tpu.memory_space<vmem>>, %arg8: memref<2x8x1xf32, #tpu.memory_space<vmem>>, %arg9: memref<2x8x1xf32, #tpu.memory_space<vmem>>, %arg10: memref<2x8x8xf32, #tpu.memory_space<vmem>>) attributes {dimension_semantics = [#tpu.dimension_semantics<parallel>, #tpu.dimension_semantics<parallel>, #tpu.dimension_semantics<arbitrary>], iteration_bounds = array<i64: 2, 2, 2>, scalar_prefetch = 0 : i64, scratch_operands = 3 : i64, tpu.core_type = #tpu.core_type<tc>, window_params = [{transform_indices = @transform_0, window_bounds = array<i64: 1, 2, 8, 8>}, {transform_indices = @transform_1, window_bounds = array<i64: 1, 2, 8, 8>}, {transform_indices = @transform_2, window_bounds = array<i64: 1, 2, 8, 8>}, {pipeline_mode = #tpu.pipeline_mode<synchronous>, transform_indices = @transform_3, window_bounds = array<i64: 2, 8, 32>}, {transform_indices = @transform_4, window_bounds = array<i64: 1, 8, 32>}]} {
    %c0_i32 = arith.constant 0 : i32
    %0 = arith.cmpi eq, %arg2, %c0_i32 : i32
    %1 = arith.extui %0 : i1 to i32
    %c0_i32_0 = arith.constant 0 : i32
    %2 = arith.cmpi ne, %1, %c0_i32_0 : i32
    scf.if %2 {
      %cst_34 = arith.constant 0xFF800000 : f32
      %35 = vector.broadcast %cst_34 : f32 to vector<2x8x1xf32>
      %c0_35 = arith.constant 0 : index
      %c0_36 = arith.constant 0 : index
      %c0_37 = arith.constant 0 : index
      %36 = vector.load %arg8[%c0_35, %c0_36, %c0_37] : memref<2x8x1xf32, #tpu.memory_space<vmem>>, vector<2x8x1xf32>
      tpu.vector_store %arg8[%c0_35, %c0_36, %c0_37], %35 {strides = array<i32>} : memref<2x8x1xf32, #tpu.memory_space<vmem>>, vector<2x8x1xf32>,
      %cst_38 = arith.constant 0.000000e+00 : f32
      %37 = vector.broadcast %cst_38 : f32 to vector<2x8x1xf32>
      %c0_39 = arith.constant 0 : index
      %c0_40 = arith.constant 0 : index
      %c0_41 = arith.constant 0 : index
      %38 = vector.load %arg9[%c0_39, %c0_40, %c0_41] : memref<2x8x1xf32, #tpu.memory_space<vmem>>, vector<2x8x1xf32>
      tpu.vector_store %arg9[%c0_39, %c0_40, %c0_41], %37 {strides = array<i32>} : memref<2x8x1xf32, #tpu.memory_space<vmem>>, vector<2x8x1xf32>,
      %cst_42 = arith.constant 0.000000e+00 : f32
      %39 = vector.broadcast %cst_42 : f32 to vector<2x8x8xf32>
      %c0_43 = arith.constant 0 : index
      %c0_44 = arith.constant 0 : index
      %c0_45 = arith.constant 0 : index
      %40 = vector.load %arg10[%c0_43, %c0_44, %c0_45] : memref<2x8x8xf32, #tpu.memory_space<vmem>>, vector<2x8x8xf32>
      tpu.vector_store %arg10[%c0_43, %c0_44, %c0_45], %39 {strides = array<i32>} : memref<2x8x8xf32, #tpu.memory_space<vmem>>, vector<2x8x8xf32>,
    } else {
    }
    %c0 = arith.constant 0 : index
    %c0_1 = arith.constant 0 : index
    %c0_2 = arith.constant 0 : index
    %c0_3 = arith.constant 0 : index
    %3 = vector.load %arg3[%c0, %c0_1, %c0_2, %c0_3] : memref<1x2x8x8xf32, #tpu.memory_space<vmem>>, vector<1x2x8x8xf32>
    %4 = vector.shape_cast %3 : vector<1x2x8x8xf32> to vector<2x8x8xf32>
    %c0_4 = arith.constant 0 : index
    %c0_5 = arith.constant 0 : index
    %c0_6 = arith.constant 0 : index
    %c0_7 = arith.constant 0 : index
    %5 = vector.load %arg4[%c0_4, %c0_5, %c0_6, %c0_7] : memref<1x2x8x8xf32, #tpu.memory_space<vmem>>, vector<1x2x8x8xf32>
    %6 = vector.shape_cast %5 : vector<1x2x8x8xf32> to vector<2x8x8xf32>
    %c0_8 = arith.constant 0 : index
    %c0_9 = arith.constant 0 : index
    %c0_10 = arith.constant 0 : index
    %c0_11 = arith.constant 0 : index
    %7 = vector.load %arg5[%c0_8, %c0_9, %c0_10, %c0_11] : memref<1x2x8x8xf32, #tpu.memory_space<vmem>>, vector<1x2x8x8xf32>
    %8 = vector.shape_cast %7 : vector<1x2x8x8xf32> to vector<2x8x8xf32>
    "tpu.trace_start"() <{level = 10 : i32, message = "nqd,nkd->nqk"}> : () -> ()
    %cst = arith.constant dense<0.000000e+00> : vector<2x8x8xf32>
    %9 = tpu.matmul %4, %6, %cst {dimension_numbers = #tpu.dot_dimension_numbers<[2], [2], [1], [1], [0, 0, 0, 1, 1, 1], [0], [0]>} : vector<2x8x8xf32>, vector<2x8x8xf32>, vector<2x8x8xf32> -> vector<2x8x8xf32>
    "tpu.trace_stop"() : () -> ()
    %c0_12 = arith.constant 0 : index
    %c0_13 = arith.constant 0 : index
    %c0_14 = arith.constant 0 : index
    %10 = vector.load %arg8[%c0_12, %c0_13, %c0_14] : memref<2x8x1xf32, #tpu.memory_space<vmem>>, vector<2x8x1xf32>
    %cst_15 = arith.constant dense<0xFF800000> : vector<2x8xf32>
    %11 = vector.multi_reduction <maximumf>, %9, %cst_15 [2] : vector<2x8x8xf32> to vector<2x8xf32>
    %12 = vector.shape_cast %11 : vector<2x8xf32> to vector<2x8x1xf32>
    %13 = arith.maximumf %10, %12 : vector<2x8x1xf32>
    %14 = arith.subf %10, %13 : vector<2x8x1xf32>
    %15 = math.exp %14 : vector<2x8x1xf32>
    %16 = vector.broadcast %13 : vector<2x8x1xf32> to vector<2x8x8xf32>
    %17 = arith.subf %9, %16 : vector<2x8x8xf32>
    %18 = math.exp %17 : vector<2x8x8xf32>
    %c0_16 = arith.constant 0 : index
    %c0_17 = arith.constant 0 : index
    %c0_18 = arith.constant 0 : index
    %19 = vector.load %arg9[%c0_16, %c0_17, %c0_18] : memref<2x8x1xf32, #tpu.memory_space<vmem>>, vector<2x8x1xf32>
    %20 = arith.mulf %15, %19 : vector<2x8x1xf32>
    %cst_19 = arith.constant dense<0.000000e+00> : vector<2x8xf32>
    %21 = vector.multi_reduction <add>, %18, %cst_19 [2] : vector<2x8x8xf32> to vector<2x8xf32>
    %22 = vector.shape_cast %21 : vector<2x8xf32> to vector<2x8x1xf32>
    %23 = arith.addf %20, %22 : vector<2x8x1xf32>
    %c0_20 = arith.constant 0 : index
    %c0_21 = arith.constant 0 : index
    %c0_22 = arith.constant 0 : index
    %24 = vector.load %arg9[%c0_20, %c0_21, %c0_22] : memref<2x8x1xf32, #tpu.memory_space<vmem>>, vector<2x8x1xf32>
    tpu.vector_store %arg9[%c0_20, %c0_21, %c0_22], %23 {strides = array<i32>} : memref<2x8x1xf32, #tpu.memory_space<vmem>>, vector<2x8x1xf32>,
    %c0_23 = arith.constant 0 : index
    %c0_24 = arith.constant 0 : index
    %c0_25 = arith.constant 0 : index
    %25 = vector.load %arg10[%c0_23, %c0_24, %c0_25] : memref<2x8x8xf32, #tpu.memory_space<vmem>>, vector<2x8x8xf32>
    %26 = vector.broadcast %15 : vector<2x8x1xf32> to vector<2x8x8xf32>
    %27 = arith.mulf %26, %25 : vector<2x8x8xf32>
    "tpu.trace_start"() <{level = 10 : i32, message = "nqk,nkd->nqd"}> : () -> ()
    %cst_26 = arith.constant dense<0.000000e+00> : vector<2x8x8xf32>
    %28 = tpu.matmul %18, %8, %cst_26 {dimension_numbers = #tpu.dot_dimension_numbers<[2], [1], [1], [2], [0, 0, 0, 1, 1, 2], [0], [0]>} : vector<2x8x8xf32>, vector<2x8x8xf32>, vector<2x8x8xf32> -> vector<2x8x8xf32>
    "tpu.trace_stop"() : () -> ()
    %29 = arith.addf %27, %28 : vector<2x8x8xf32>
    %c0_27 = arith.constant 0 : index
    %c0_28 = arith.constant 0 : index
    %c0_29 = arith.constant 0 : index
    %30 = vector.load %arg10[%c0_27, %c0_28, %c0_29] : memref<2x8x8xf32, #tpu.memory_space<vmem>>, vector<2x8x8xf32>
    tpu.vector_store %arg10[%c0_27, %c0_28, %c0_29], %29 {strides = array<i32>} : memref<2x8x8xf32, #tpu.memory_space<vmem>>, vector<2x8x8xf32>,
    %c0_30 = arith.constant 0 : index
    %c0_31 = arith.constant 0 : index
    %c0_32 = arith.constant 0 : index
    %31 = vector.load %arg8[%c0_30, %c0_31, %c0_32] : memref<2x8x1xf32, #tpu.memory_space<vmem>>, vector<2x8x1xf32>
    tpu.vector_store %arg8[%c0_30, %c0_31, %c0_32], %13 {strides = array<i32>} : memref<2x8x1xf32, #tpu.memory_space<vmem>>, vector<2x8x1xf32>,
    %c1_i32 = arith.constant 1 : i32
    %32 = arith.cmpi eq, %arg2, %c1_i32 : i32
    %33 = arith.extui %32 : i1 to i32
    %c0_i32_33 = arith.constant 0 : i32
    %34 = arith.cmpi ne, %33, %c0_i32_33 : i32
    scf.if %34 {
      %c0_34 = arith.constant 0 : index
      %c0_35 = arith.constant 0 : index
      %c0_36 = arith.constant 0 : index
      %35 = vector.load %arg10[%c0_34, %c0_35, %c0_36] : memref<2x8x8xf32, #tpu.memory_space<vmem>>, vector<2x8x8xf32>
      %c0_37 = arith.constant 0 : index
      %c0_38 = arith.constant 0 : index
      %c0_39 = arith.constant 0 : index
      %36 = vector.load %arg9[%c0_37, %c0_38, %c0_39] : memref<2x8x1xf32, #tpu.memory_space<vmem>>, vector<2x8x1xf32>
      %37 = tpu.reciprocal %36 {approx = true} : vector<2x8x1xf32> -> vector<2x8x1xf32>
      %38 = vector.broadcast %37 : vector<2x8x1xf32> to vector<2x8x8xf32>
      %39 = arith.mulf %35, %38 : vector<2x8x8xf32>
      %40 = vector.extract_strided_slice %39 {offsets = [0, 0, 0], sizes = [1, 8, 8], strides = [1, 1, 1]} : vector<2x8x8xf32> to vector<1x8x8xf32>
      %41 = vector.shape_cast %40 : vector<1x8x8xf32> to vector<8x8xf32>
      %c0_40 = arith.constant 0 : index
      %c0_41 = arith.constant 0 : index
      %c0_42 = arith.constant 0 : index
      %42 = vector.load %arg6[%c0_40, %c0_41, %c0_42] : memref<2x8x32xf32, #tpu.memory_space<vmem>>, vector<1x8x32xf32>
      %43 = vector.shape_cast %42 : vector<1x8x32xf32> to vector<8x32xf32>
      %cst_43 = arith.constant dense<0.000000e+00> : vector<8x32xf32>
      %44 = tpu.matmul %41, %43, %cst_43 {dimension_numbers = #tpu.dot_dimension_numbers<[1], [0], [0], [1], [0, 0, 1, 1], [], []>} : vector<8x8xf32>, vector<8x32xf32>, vector<8x32xf32> -> vector<8x32xf32>
      %45 = vector.extract_strided_slice %39 {offsets = [1, 0, 0], sizes = [1, 8, 8], strides = [1, 1, 1]} : vector<2x8x8xf32> to vector<1x8x8xf32>
      %46 = vector.shape_cast %45 : vector<1x8x8xf32> to vector<8x8xf32>
      %c1 = arith.constant 1 : index
      %c0_44 = arith.constant 0 : index
      %c0_45 = arith.constant 0 : index
      %47 = vector.load %arg6[%c1, %c0_44, %c0_45] : memref<2x8x32xf32, #tpu.memory_space<vmem>>, vector<1x8x32xf32>
      %48 = vector.shape_cast %47 : vector<1x8x32xf32> to vector<8x32xf32>
      %cst_46 = arith.constant dense<0.000000e+00> : vector<8x32xf32>
      %49 = tpu.matmul %46, %48, %cst_46 {dimension_numbers = #tpu.dot_dimension_numbers<[1], [0], [0], [1], [0, 0, 1, 1], [], []>} : vector<8x8xf32>, vector<8x32xf32>, vector<8x32xf32> -> vector<8x32xf32>
      %50 = arith.addf %44, %49 : vector<8x32xf32>
      %c0_47 = arith.constant 0 : index
      %c0_48 = arith.constant 0 : index
      %c0_49 = arith.constant 0 : index
      %51 = vector.load %arg7[%c0_47, %c0_48, %c0_49] : memref<1x8x32xf32, #tpu.memory_space<vmem>>, vector<1x8x32xf32>
      %52 = vector.shape_cast %51 : vector<1x8x32xf32> to vector<8x32xf32>
      %53 = vector.shape_cast %50 : vector<8x32xf32> to vector<1x8x32xf32>
      tpu.vector_store %arg7[%c0_47, %c0_48, %c0_49], %53 {strides = array<i32>} : memref<1x8x32xf32, #tpu.memory_space<vmem>>, vector<1x8x32xf32>,
    } else {
    }
    return
  }
  func.func @transform_0(%arg0: i32, %arg1: i32, %arg2: i32) -> (i32, i32, i32, i32) {
    %c0_i32 = arith.constant 0 : i32
    %c0_i32_0 = arith.constant 0 : i32
    %c0_i32_1 = arith.constant 0 : i32
    return %arg0, %c0_i32, %arg1, %c0_i32_0 : i32, i32, i32, i32
  }
  func.func @transform_1(%arg0: i32, %arg1: i32, %arg2: i32) -> (i32, i32, i32, i32) {
    %c0_i32 = arith.constant 0 : i32
    %c0_i32_0 = arith.constant 0 : i32
    %c0_i32_1 = arith.constant 0 : i32
    return %arg0, %c0_i32, %arg2, %c0_i32_0 : i32, i32, i32, i32
  }
  func.func @transform_2(%arg0: i32, %arg1: i32, %arg2: i32) -> (i32, i32, i32, i32) {
    %c0_i32 = arith.constant 0 : i32
    %c0_i32_0 = arith.constant 0 : i32
    %c0_i32_1 = arith.constant 0 : i32
    return %arg0, %c0_i32, %arg2, %c0_i32_0 : i32, i32, i32, i32
  }
  func.func @transform_3(%arg0: i32, %arg1: i32, %arg2: i32) -> (i32, i32, i32) {
    %c0_i32 = arith.constant 0 : i32
    %c0_i32_0 = arith.constant 0 : i32
    %c0_i32_1 = arith.constant 0 : i32
    %c0_i32_2 = arith.constant 0 : i32
    return %c0_i32, %c0_i32_0, %c0_i32_1 : i32, i32, i32
  }
  func.func @transform_4(%arg0: i32, %arg1: i32, %arg2: i32) -> (i32, i32, i32) {
    %c0_i32 = arith.constant 0 : i32
    %c0_i32_0 = arith.constant 0 : i32
    return %arg0, %arg1, %c0_i32 : i32, i32, i32
  }
}

module attributes {stable_mosaic.version = 11 : i64} {
  func.func @_qkv_proj_kernel(%arg0: i32, %arg1: i32, %arg2: i32, %arg3: memref<1x8x32xf32, #tpu.memory_space<vmem>>, %arg4: memref<2x32x24xf32, #tpu.memory_space<vmem>>, %arg5: memref<1x1x8x8xf32, #tpu.memory_space<vmem>>, %arg6: memref<1x1x8x8xf32, #tpu.memory_space<vmem>>, %arg7: memref<1x1x8x8xf32, #tpu.memory_space<vmem>>) attributes {dimension_semantics = [#tpu.dimension_semantics<parallel>, #tpu.dimension_semantics<parallel>, #tpu.dimension_semantics<arbitrary>], iteration_bounds = array<i64: 2, 2, 2>, scalar_prefetch = 0 : i64, scratch_operands = 0 : i64, tpu.core_type = #tpu.core_type<tc>, window_params = [{transform_indices = @transform_0, window_bounds = array<i64: 1, 8, 32>}, {pipeline_mode = #tpu.pipeline_mode<synchronous>, transform_indices = @transform_1, window_bounds = array<i64: 2, 32, 24>}, {transform_indices = @transform_2, window_bounds = array<i64: 1, 1, 8, 8>}, {transform_indices = @transform_3, window_bounds = array<i64: 1, 1, 8, 8>}, {transform_indices = @transform_4, window_bounds = array<i64: 1, 1, 8, 8>}]} {
    %c0 = arith.constant 0 : index
    %c0_0 = arith.constant 0 : index
    %c0_1 = arith.constant 0 : index
    %0 = vector.load %arg3[%c0, %c0_0, %c0_1] : memref<1x8x32xf32, #tpu.memory_space<vmem>>, vector<1x8x32xf32>
    %1 = vector.shape_cast %0 : vector<1x8x32xf32> to vector<8x32xf32>
    %2 = arith.index_cast %arg2 : i32 to index
    %c0_2 = arith.constant 0 : index
    %c0_3 = arith.constant 0 : index
    %3 = vector.load %arg4[%2, %c0_2, %c0_3] : memref<2x32x24xf32, #tpu.memory_space<vmem>>, vector<1x32x24xf32>
    %4 = vector.shape_cast %3 : vector<1x32x24xf32> to vector<32x24xf32>
    %cst = arith.constant dense<0.000000e+00> : vector<8x24xf32>
    %5 = tpu.matmul %1, %4, %cst {dimension_numbers = #tpu.dot_dimension_numbers<[1], [0], [0], [1], [0, 0, 1, 1], [], []>} : vector<8x32xf32>, vector<32x24xf32>, vector<8x24xf32> -> vector<8x24xf32>
    %6 = vector.extract_strided_slice %5 {offsets = [0, 0], sizes = [8, 8], strides = [1, 1]} : vector<8x24xf32> to vector<8x8xf32>
    %c0_4 = arith.constant 0 : index
    %c0_5 = arith.constant 0 : index
    %c0_6 = arith.constant 0 : index
    %c0_7 = arith.constant 0 : index
    %7 = vector.load %arg5[%c0_4, %c0_5, %c0_6, %c0_7] : memref<1x1x8x8xf32, #tpu.memory_space<vmem>>, vector<1x1x8x8xf32>
    %8 = vector.shape_cast %7 : vector<1x1x8x8xf32> to vector<8x8xf32>
    %9 = vector.shape_cast %6 : vector<8x8xf32> to vector<1x1x8x8xf32>
    tpu.vector_store %arg5[%c0_4, %c0_5, %c0_6, %c0_7], %9 {strides = array<i32>} : memref<1x1x8x8xf32, #tpu.memory_space<vmem>>, vector<1x1x8x8xf32>,
    %10 = vector.extract_strided_slice %5 {offsets = [0, 8], sizes = [8, 8], strides = [1, 1]} : vector<8x24xf32> to vector<8x8xf32>
    %c0_8 = arith.constant 0 : index
    %c0_9 = arith.constant 0 : index
    %c0_10 = arith.constant 0 : index
    %c0_11 = arith.constant 0 : index
    %11 = vector.load %arg6[%c0_8, %c0_9, %c0_10, %c0_11] : memref<1x1x8x8xf32, #tpu.memory_space<vmem>>, vector<1x1x8x8xf32>
    %12 = vector.shape_cast %11 : vector<1x1x8x8xf32> to vector<8x8xf32>
    %13 = vector.shape_cast %10 : vector<8x8xf32> to vector<1x1x8x8xf32>
    tpu.vector_store %arg6[%c0_8, %c0_9, %c0_10, %c0_11], %13 {strides = array<i32>} : memref<1x1x8x8xf32, #tpu.memory_space<vmem>>, vector<1x1x8x8xf32>,
    %14 = vector.extract_strided_slice %5 {offsets = [0, 16], sizes = [8, 8], strides = [1, 1]} : vector<8x24xf32> to vector<8x8xf32>
    %c0_12 = arith.constant 0 : index
    %c0_13 = arith.constant 0 : index
    %c0_14 = arith.constant 0 : index
    %c0_15 = arith.constant 0 : index
    %15 = vector.load %arg7[%c0_12, %c0_13, %c0_14, %c0_15] : memref<1x1x8x8xf32, #tpu.memory_space<vmem>>, vector<1x1x8x8xf32>
    %16 = vector.shape_cast %15 : vector<1x1x8x8xf32> to vector<8x8xf32>
    %17 = vector.shape_cast %14 : vector<8x8xf32> to vector<1x1x8x8xf32>
    tpu.vector_store %arg7[%c0_12, %c0_13, %c0_14, %c0_15], %17 {strides = array<i32>} : memref<1x1x8x8xf32, #tpu.memory_space<vmem>>, vector<1x1x8x8xf32>,
    return
  }
  func.func @transform_0(%arg0: i32, %arg1: i32, %arg2: i32) -> (i32, i32, i32) {
    %c0_i32 = arith.constant 0 : i32
    %c0_i32_0 = arith.constant 0 : i32
    return %arg0, %arg1, %c0_i32 : i32, i32, i32
  }
  func.func @transform_1(%arg0: i32, %arg1: i32, %arg2: i32) -> (i32, i32, i32) {
    %c0_i32 = arith.constant 0 : i32
    %c0_i32_0 = arith.constant 0 : i32
    %c0_i32_1 = arith.constant 0 : i32
    %c0_i32_2 = arith.constant 0 : i32
    return %c0_i32, %c0_i32_0, %c0_i32_1 : i32, i32, i32
  }
  func.func @transform_2(%arg0: i32, %arg1: i32, %arg2: i32) -> (i32, i32, i32, i32) {
    %c0_i32 = arith.constant 0 : i32
    %c0_i32_0 = arith.constant 0 : i32
    return %arg0, %arg2, %arg1, %c0_i32 : i32, i32, i32, i32
  }
  func.func @transform_3(%arg0: i32, %arg1: i32, %arg2: i32) -> (i32, i32, i32, i32) {
    %c0_i32 = arith.constant 0 : i32
    %c0_i32_0 = arith.constant 0 : i32
    return %arg0, %arg2, %arg1, %c0_i32 : i32, i32, i32, i32
  }
  func.func @transform_4(%arg0: i32, %arg1: i32, %arg2: i32) -> (i32, i32, i32, i32) {
    %c0_i32 = arith.constant 0 : i32
    %c0_i32_0 = arith.constant 0 : i32
    return %arg0, %arg2, %arg1, %c0_i32 : i32, i32, i32, i32
  }
}

</mosaic_0001>

<bundles_post_ra>
// kernel: multi_head_attention.2
= control target key start
LH: loop header
LB: loop body
LE: loop exit
PB: predicated region body
PF: predicated region fallthrough
CT: control target
= control target key end

     0   :  { %s824_s15 = smov 0   ;;  %s826_s16 = smov 0   ;;  %s915_s0 = inlined_call_operand.vmem [shape: f32[2,16,32], index: 0, kind: input, shape index: {}]   ;;  %s916_s1 = inlined_call_operand.vmem [shape: f32[2,32,24], index: 1, kind: input, shape index: {}]   ;;  %s917_s2 = inlined_call_operand.vmem [shape: f32[2,2,16,8], index: 2, kind: output, shape index: {0}]   ;;  %s918_s3 = inlined_call_operand.vmem [shape: f32[2,2,16,8], index: 3, kind: output, shape index: {1}]   ;;  %s919_s4 = inlined_call_operand.vmem [shape: f32[2,2,16,8], index: 4, kind: output, shape index: {2}]  }
   0x1   :  { %s828_s17 = smov 0   ;;  %s830_s18 = smov 0  }
   0x2   :  { %s832_s19 = smov 0   ;;  %s834_s20 = smov 0  }
   0x3   :  { %s836_s21 = smov 0  }
   0x4 LB: > { %s27_s22 = sadd.s32 1, %s780_s18  ;;  %s30_s23 = sadd.s32 1, %s784_s19  ;;  %s792_s21 = sphi %s836_s21, %s15_s21   ;;  %s788_s20 = sphi %s834_s20, %s925_s20   ;;  %s784_s19 = sphi %s832_s19, %s924_s19   ;;  %s780_s18 = sphi %s830_s18, %s923_s18   ;;  %s776_s17 = sphi %s828_s17, %s922_s17   ;;  %s772_s16 = sphi %s826_s16, %s921_s16   ;;  %s768_s15 = sphi %s824_s15, %s920_s15  }
   0x5   : > { %p28_p0 = scmp.ge.s32.totalorder %s27_s22, 2  ;;  %p639_p1 = scmp.ge.s32.totalorder %s792_s21, 1 }
   0x6   : > { %p203_p2 = scmp.lt.s32.totalorder %s792_s21, 9  ;;  %s34_s24 = sadd.s32 1, %s788_s20 }
   0x7   : > { %s927_s22 = smov (%p28_p0, %s27_s22), 0  ;;  %s929_s23 = smov (!%p28_p0, %s30_s23), %s784_s19 }
   0x8   : > { %p204_p3 = pnand %p639_p1, %p203_p2  ;;  %p32_p4 = scmp.ge.s32.totalorder %s929_s23, 2 }
   0x9   : > { %s651_s25 = sshll.u32 (!%p204_p3), %s768_s15, 5  ;;  %p263_p6 = scmp.lt.s32.totalorder (!%p204_p3), %s776_s17, 1  ;;  %v794_v0 = vmov (!%p204_p3), 0.0|0.0   ;;  %vm795_vm0 = vmmov (!%p204_p3), 0   ;;  %v796_v1 = vmov (!%p204_p3), 0.0   ;;  %vm314_vm1 = vcmask (!%p204_p3), 261120  }
   0xa   : > { %s931_s23 = smov (%p32_p4, %s929_s23), 0  ;;  %s933_s24 = smov (!%p32_p4, %s34_s24), %s788_s20 }
   0xb   : > { %p36_p5 = scmp.ge.s32.totalorder %s933_s24, 2  ;;  %207 = sbr.rel (%p204_p3) target bundleno = 356 (0x164), region = 28  ;;  %671 = vmatprep.subr.bf16.mxu0 (!%p204_p3), %v794_v0  ;;  %668 = vmatprep.mubr.msk.f32.mxu0 (!%p204_p3), %vm795_vm0, %v796_v1  ;;  %vm388_vm2 = vcmask (!%p204_p3), 64512  }
   0xc   : > { %s309_s28 = scalar_lea.vmem (!%p204_p3), %s916_s1, %s651_s25  ;;  %p265_p7 = scmp.lt.s32.totalorder (!%p204_p3), %s772_s16, 1 }
   0xd   : > { %s935_s24 = smov (%p36_p5, %s933_s24), 0  ;;  %v310_v2 = vld [vmem:[%s309_s28] sm:$0xff] (!%p204_p3)  ;;  %v311_v3 = vld [vmem:[%s309_s28 + $0x8] sm:$0xff] (!%p204_p3)  ;;  %v312_v4 = vld [vmem:[%s309_s28 + $0x10] sm:$0xff] (!%p204_p3)  ;;  %p273_p8 = scmp.lt.s32.totalorder (!%p204_p3), %s768_s15, 1 }
   0xe   : > { %v672_v5 = vpack.c.bf16 (!%p204_p3), %v311_v3, %v310_v2  ;;  %v313_v6 = vld [vmem:[%s309_s28 + $0x18] sm:$0xff] (!%p204_p3)  ;;  %s797_s27 = smov (!%p204_p3), 120   ;;  %s798_s28 = smov (!%p204_p3), 112  }
   0xf   : > { %v675_v7 = vpack.c.bf16 (!%p204_p3), %v313_v6, %v312_v4 }
  0x10   : > { %673 = vmatpush3.bf16.msra.mxu0 (!%p204_p3), %v672_v5 }
  0x11   : > { %674 = vmatprep.subr.bf16.mxu0 (!%p204_p3), %v794_v0 }
  0x12   : > { %s937_s17 = smov (!%p263_p6, %s776_s17), 1  ;;  %s939_s16 = smov (!%p265_p7, %s772_s16), 1 }
  0x13   : > { %s640_s29 = sshll.u32 %s937_s17, 1  ;;  %s941_s15 = smov (!%p273_p8, %s768_s15), 1 }
  0x14   : > { %s268_s30 = sadd.s32 %s640_s29, %s939_s16  ;;  %676 = vmatpush3.bf16.msra.mxu0 %v675_v7  ;;  %s643_s9 = sshll.u32 %s937_s17, 2 }
  0x15   : > { %s641_s5 = sshll.u32 %s268_s30, 3  ;;  %s642_s10 = sshll.u32 %s941_s15, 1 }
  0x16   : > { %s270_s8 = scalar_lea.vmem %s915_s0, %s641_s5  ;;  %s278_s11 = sadd.s32 %s642_s10, %s939_s16 }
  0x17   : > { %v307_v8 = vld [vmem:[%s270_s8] sm:$0xff]  ;;  %s280_s12 = sadd.s32 %s643_s9, %s278_s11 }
  0x18   : > { %669 = vmatmul.mubr.msk.f32.vlgmr.msra.gmra.mrb[0].mxu0 %vm314_vm1, %v307_v8  ;;  %s644_s13 = sshll.u32 %s280_s12, 3 }
  0x19   : > { %s282_s26 = scalar_lea.vmem %s917_s2, %s644_s13  ;;  %s294_s15 = scalar_lea.vmem %s918_s3, %s644_s13 }
  0x1a   : > { %s306_s5 = scalar_lea.vmem %s919_s4, %s644_s13 }
  0xeb   : > { %v384_v9 = vpop.f32.mrb[0].mxu0 }
  0xec   : > { %389 = vst.msk [vmem:[%s282_s26] sm:$0xff] %vm388_vm2, %v384_v9  ;;  %391 = vrot.lane.b32.xlu0 %v384_v9, %s797_s27  ;;  %v670_v10 = vpop.f32.mrb[1].mxu0 }
  0xf0   : > { %395 = vrot.lane.b32.xlu0 %v384_v9, %s798_s28 }
 0x15e   : > { %v392_v11 = vpop.permute.xlu0 %391 }
 0x15f   : > { %394 = vst.msk [vmem:[%s294_s15] sm:$0xff] %vm388_vm2, %v392_v11 }
 0x162   : > { %v396_v12 = vpop.permute.xlu0 %395 }
 0x163   : > { %398 = vst.msk [vmem:[%s306_s5] sm:$0xff] %vm388_vm2, %v396_v12 }
 0x164 PF: > { %s15_s21 = sadd.s32 1, %s792_s21   ;;  %s920_s15 = smov %s780_s18 }
 0x165   : > { %p12_p9 = scmp.ge.s32.totalorder %s15_s21, 10   ;;  %s921_s16 = smov %s784_s19 }
 0x166   : > { %s922_s17 = smov %s788_s20  ;;  %s923_s18 = smov %s927_s22 }
 0x167   : > { %s924_s19 = smov %s931_s23  ;;  %s925_s20 = smov %s935_s24 }
 0x168   :  { %14 = sbr.rel (!%p12_p9) target bundleno = 4 (0x4), region = 83 }

// kernel: multi_head_attention.3
= control target key start
LH: loop header
LB: loop body
LE: loop exit
PB: predicated region body
PF: predicated region fallthrough
CT: control target
= control target key end

     0   :  { %9 = vsyncpa [#allocation9], 0  ;;  %s1698_s0 = inlined_call_operand.vmem [shape: f32[2,2,16,8], index: 0, kind: input, shape index: {}]   ;;  %s1699_s1 = inlined_call_operand.vmem [shape: f32[2,2,16,8], index: 1, kind: input, shape index: {}]   ;;  %s1700_s2 = inlined_call_operand.vmem [shape: f32[2,2,16,8], index: 2, kind: input, shape index: {}]   ;;  %s1701_s3 = inlined_call_operand.vmem [shape: f32[2,8,32], index: 3, kind: input, shape index: {}]   ;;  %s1702_s4 = inlined_call_operand.hbm [shape: f32[2,16,32], index: 4, kind: output, shape index: {}]  }
   0x1   :  { %11 = vsyncpa [#allocation9 + $0x1], 0  ;;  %s1447_s15 = smov 0   ;;  %s1449_s16 = smov 0  }
   0x2   :  { %s1451_s17 = smov 0   ;;  %s1453_s18 = smov 0  }
   0x3   :  { %s1455_s19 = smov 0   ;;  %s1457_s20 = smov 0  }
   0x4   :  { %s1459_s21 = smov 0   ;;  %s1461_s22 = smov 0  }
   0x5   :  { %s1463_s23 = smov 0   ;;  %s1465_s24 = smov 0  }
   0x6   :  { %s1467_s25 = smov 0   ;;  %s1469_s26 = smov 0  }
   0x7 LB: > { %1709 = sst [smem:[#allocation11_spill]] %s1367_s15  ;;  %s1082_s27 = sadd.s32 4294967295, %s1411_s26   ;;  %s1411_s26 = sphi %s1469_s26, %s17_s26   ;;  %s1407_s25 = sphi %s1467_s25, %s1733_s25   ;;  %s1403_s24 = sphi %s1465_s24, %s1723_s24   ;;  %s1399_s23 = sphi %s1463_s23, %s1732_s23   ;;  %s1395_s22 = sphi %s1461_s22, %s1731_s22   ;;  %s1391_s21 = sphi %s1459_s21, %s1721_s21   ;;  %s1387_s20 = sphi %s1457_s20, %s1730_s20   ;;  %s1383_s19 = sphi %s1455_s19, %s1729_s19   ;;  %s1379_s18 = sphi %s1453_s18, %s1728_s18   ;;  %s1375_s17 = sphi %s1451_s17, %s1727_s17   ;;  %s1371_s16 = sphi %s1449_s16, %s1726_s16   ;;  %s1367_s15 = sphi %s1447_s15, %s1725_s15  }
   0x8   : > { %1710 = sst [smem:[#allocation12_spill]] %s1403_s24  ;;  %s1083_s28 = sadd.s32 4294967294, %s1411_s26  }
   0x9   : > { %s29_s29 = sadd.s32 1, %s1399_s23  ;;  %s32_s30 = sadd.s32 1, %s1403_s24 }
   0xa   : > { %p30_p0 = scmp.ge.s32.totalorder %s29_s29, 2  ;;  %s36_s5 = sadd.s32 1, %s1407_s25 }
   0xb   : > { %p52_p1 = scmp.ne.s32.totalorder %s1383_s19, %s1379_s18  ;;  %s45_s6 = sadd.s32 1, %s1383_s19 }
   0xc   : > { %s1735_s29 = smov (%p30_p0, %s29_s29), 0  ;;  %s1737_s30 = smov (!%p30_p0, %s32_s30), %s1403_s24 }
   0xd   : > { %1711 = sst [smem:[#allocation13_spill]] %s1735_s29  ;;  %p53_p2 = scmp.eq.s32.totalorder %s1411_s26, 0 }
   0xe   : > { %p34_p3 = scmp.ge.s32.totalorder %s1737_s30, 2  ;;  %s69_s7 = ssub.s32 %s1399_s23, %s1735_s29 }
   0xf   : > { %p1524_p4 = por %p53_p2, %p52_p1  ;;  %p80_p5 = scmp.ne.s32.totalorder %s1375_s17, %s1371_s16 }
  0x10   : > { %s1739_s30 = smov (%p34_p3, %s1737_s30), 0  ;;  %s1741_s5 = smov (!%p34_p3, %s36_s5), %s1407_s25 }
  0x11   : > { %1713 = sst [smem:[#allocation14_spill]] %s1739_s30  ;;  %s41_s9 = ssub.s32 %s1403_s24, %s1739_s30 }
  0x12   : > { %p1535_p6 = por %p80_p5, %p53_p2  ;;  %p38_p7 = scmp.ge.s32.totalorder %s1741_s5, 2 }
  0x13   : > { %p161_p8 = scmp.eq.s32.totalorder %s1082_s27, 7  ;;  %p166_p9 = scmp.ne.s32.totalorder %s1379_s18, %s1367_s15 }
  0x14   : > { %p167_p10 = scmp.eq.s32.totalorder %s1083_s28, 7  ;;  %s1743_s5 = smov (%p38_p7, %s1741_s5), 0 }
  0x15   : > { %1715 = sst [smem:[#allocation15_spill]] %s1743_s5  ;;  %p1546_p11 = por %p161_p8, %p52_p1 }
  0x16   : > { %p1550_p12 = por %p167_p10, %p166_p9  ;;  %s40_s13 = ssub.s32 %s1407_s25, %s1743_s5 }
  0x17   : > { %s73_s14 = sadd.s32 1, %s1375_s17  ;;  %s42_s30 = sor.u32 %s41_s9, %s40_s13 }
  0x18   : > { %s1717_s12 = scalar_select %p1550_p12, 1, 0 }
  0x19   : > { %s70_s29 = sor.u32 %s69_s7, %s40_s13  ;;  %p43_p13 = scmp.eq.s32.totalorder %s42_s30, 0 }
  0x1a   : > { %1718 = sst [smem:[#allocation16_spill]] %s1717_s12  ;;  %p71_p0 = scmp.eq.s32.totalorder %s70_s29, 0 }
  0x1b   : > { %s1558_s27 = scalar_select %p43_p13, %s1383_s19, %s45_s6  }
  0x1c   : > { %s1561_s28 = scalar_select %p71_p0, %s1375_s17, %s73_s14  }
  0x1d   : > { %p1085_p2 = scmp.ge.s32.totalorder %s1411_s26, 8 }
  0x1f   : > { %186 = sbr.rel (%p1085_p2) target bundleno = 59 (0x3b), region = 20 }
  0x26   : > { %189 = sbr.rel (!%p1524_p4) target bundleno = 45 (0x2d), region = 24  ;;  %s191_s12 = sand.u32 (%p1524_p4), 1, %s1383_s19  }
  0x27   : > { %s1087_s5 = sshll.u32 (%p1524_p4), %s1407_s25, 2  ;;  %s1086_s15 = sshll.u32 (%p1524_p4), %s191_s12, 4 }
  0x28   : > { %s195_s9 = sadd.s32 (%p1524_p4), %s1403_s24, %s1087_s5  ;;  %s193_s13 = scalar_lea.vmem (%p1524_p4), [#allocation5], %s1086_s15 }
  0x29   : > { %s1088_s7 = sshll.u32 (%p1524_p4), %s195_s9, 3 }
  0x2a   : > { %s197_s6 = scalar_lea.vmem (%p1524_p4), %s1698_s0, %s1088_s7 }
  0x2b   : > { %v227_v0 = vld [vmem:[%s197_s6] sm:$0xff] (%p1524_p4)  ;;  %v229_v1 = vld [vmem:[%s197_s6 + $0x10] sm:$0xff] (%p1524_p4) }
  0x2c   : > { %228 = vst [vmem:[%s193_s13] sm:$0xff] (%p1524_p4), %v227_v0  ;;  %230 = vst [vmem:[%s193_s13 + $0x8] sm:$0xff] (%p1524_p4), %v229_v1 }
  0x2d PF: > { %236 = sbr.rel (!%p1535_p6) target bundleno = 52 (0x34), region = 62  ;;  %s238_s8 = sand.u32 (%p1535_p6), 1, %s1375_s17  }
  0x2e   : > { %s1090_s12 = sshll.u32 (%p1535_p6), %s1407_s25, 2  ;;  %s1089_s5 = sshll.u32 (%p1535_p6), %s238_s8, 4 }
  0x2f   : > { %s242_s14 = sadd.s32 (%p1535_p6), %s1399_s23, %s1090_s12  ;;  %s240_s15 = scalar_lea.vmem (%p1535_p6), [#allocation6], %s1089_s5 }
  0x30   : > { %s1091_s9 = sshll.u32 (%p1535_p6), %s242_s14, 3 }
  0x31   : > { %s244_s7 = scalar_lea.vmem (%p1535_p6), %s1699_s1, %s1091_s9 }
  0x32   : > { %v274_v2 = vld [vmem:[%s244_s7] sm:$0xff] (%p1535_p6)  ;;  %v276_v3 = vld [vmem:[%s244_s7 + $0x10] sm:$0xff] (%p1535_p6) }
  0x33   : > { %275 = vst [vmem:[%s240_s15] sm:$0xff] (%p1535_p6), %v274_v2  ;;  %277 = vst [vmem:[%s240_s15 + $0x8] sm:$0xff] (%p1535_p6), %v276_v3 }
  0x34 PF: > { %283 = sbr.rel (!%p1535_p6) target bundleno = 59 (0x3b), region = 100  ;;  %s285_s29 = sand.u32 (%p1535_p6), 1, %s1375_s17  }
  0x35   : > { %s1093_s6 = sshll.u32 (%p1535_p6), %s1407_s25, 2  ;;  %s1092_s13 = sshll.u32 (%p1535_p6), %s285_s29, 4 }
  0x36   : > { %s289_s8 = sadd.s32 (%p1535_p6), %s1399_s23, %s1093_s6  ;;  %s287_s5 = scalar_lea.vmem (%p1535_p6), [#allocation7], %s1092_s13 }
  0x37   : > { %s1094_s12 = sshll.u32 (%p1535_p6), %s289_s8, 3 }
  0x38   : > { %s291_s9 = scalar_lea.vmem (%p1535_p6), %s1700_s2, %s1094_s12 }
  0x39   : > { %v321_v4 = vld [vmem:[%s291_s9] sm:$0xff] (%p1535_p6)  ;;  %v323_v5 = vld [vmem:[%s291_s9 + $0x10] sm:$0xff] (%p1535_p6) }
  0x3a   : > { %322 = vst [vmem:[%s287_s5] sm:$0xff] (%p1535_p6), %v321_v4  ;;  %324 = vst [vmem:[%s287_s5 + $0x8] sm:$0xff] (%p1535_p6), %v323_v5 }
  0x3b PF: > { %p1095_p1 = scmp.ge.s32.totalorder %s1411_s26, 1  ;;  %p329_p3 = scmp.lt.s32.totalorder %s1411_s26, 9 }
  0x3d   : > { %p330_p4 = pnand %p1095_p1, %p329_p3 }
  0x3e   : > { %s1591_s10 = sand.u32 (!%p330_p4), 1, %s1379_s18   ;;  %s343_s30 = sand.u32 (!%p330_p4), 1, %s1371_s16  }
  0x3f   : > { %333 = sbr.rel (%p330_p4) target bundleno = 1121 (0x461), region = 138  ;;  %s1096_s7 = sshll.u32 (!%p330_p4), %s1591_s10, 4 }
  0x40   : > { %s1595_s15 = sshll.u32 (!%p330_p4), %s343_s30, 4  ;;  %s1099_s29 = sshll.u32 (!%p330_p4), %s1591_s10, 3 }
  0x41   : > { %s338_s6 = scalar_lea.vmem (!%p330_p4), [#allocation5], %s1096_s7  ;;  %s345_s13 = scalar_lea.vmem (!%p330_p4), [#allocation6], %s1595_s15 }
  0x42   : > { %s352_s8 = scalar_lea.vmem (!%p330_p4), [#allocation7], %s1595_s15  ;;  %s1600_s12 = scalar_lea.vmem (!%p330_p4), [#allocation8], %s1099_s29 }
  0x43   : > { %p1100_p5 = scmp.ne.s32.totalorder (!%p330_p4), %s1387_s20, 0 }
  0x46   : > { %386 = sbr.rel (%p1100_p5) target bundleno = 77 (0x4d), region = 154  ;;  %vm387_vm0 = vcmask (!%p1100_p5), 7168   ;;  %vm392_vm1 = vcmask (!%p1100_p5), 64512   ;;  %v1413_v6 = vmov (!%p1100_p5), -inf   ;;  %v1414_v7 = vmov (!%p1100_p5), 0.0  }
  0x47   : > { %388 = vst.msk [vmem:[#allocation2] sm:$0xff] (!%p1100_p5), %vm387_vm0, %v1413_v6  ;;  %389 = vst.msk [vmem:[#allocation2 + $0x8] sm:$0xff] (!%p1100_p5), %vm387_vm0, %v1413_v6 }
  0x48   : > { %390 = vst.msk [vmem:[#allocation3] sm:$0xff] (!%p1100_p5), %vm387_vm0, %v1414_v7  ;;  %391 = vst.msk [vmem:[#allocation3 + $0x8] sm:$0xff] (!%p1100_p5), %vm387_vm0, %v1414_v7 }
  0x49   : > { %393 = vst.msk [vmem:[#allocation4] sm:$0xff] (!%p1100_p5), %vm392_vm1, %v1414_v7  ;;  %394 = vst.msk [vmem:[#allocation4 + $0x8] sm:$0xff] (!%p1100_p5), %vm392_vm1, %v1414_v7 }
  0x4d PF: > { %v397_v8 = vld [vmem:[%s345_s13] sm:$0xff]  ;;  %vm401_vm2 = vcmask 64512   ;;  %v398_v9 = vld [vmem:[%s345_s13 + $0x8] sm:$0xff]  ;;  %v1415_v10 = vmov 0.0   ;;  %vm1416_vm3 = vmmov 0   ;;  %v1417_v19 = vmov 0  }
  0x4e   : > { %1128 = vmatprep.subr.mxu0 %v1415_v10  ;;  %1130 = vmatprep.mubr.msk.f32.mxu0 %vm1416_vm3, %v1415_v10  ;;  %v395_v11 = vld [vmem:[%s338_s6] sm:$0xff]  ;;  %v396_v12 = vld [vmem:[%s338_s6 + $0x8] sm:$0xff]  ;;  %vm598_vm4 = vcmask 7168   ;;  %p1107_p6 = scmp.ne.s32.totalorder %s1387_s20, 1 }
  0x4f   : > { %1129 = vmatpush3.xpose.msk.msra.mxu0 %vm401_vm2, %v397_v8  ;;  %1133 = vmatprep.subr.mxu1 %v1415_v10  ;;  %v554_v20 = vld [vmem:[#allocation2] sm:$0xff]  ;;  %v555_v23 = vld [vmem:[#allocation2 + $0x8] sm:$0xff]  ;;  %v586_v44 = vld [vmem:[#allocation3] sm:$0xff]  ;;  %v1418_v2 = vmov (!%p1107_p6), 0   ;;  %v1419_v4 = vmov (!%p1107_p6), 0.0   ;;  %vm1420_vm5 = vmmov (!%p1107_p6), 0  }
  0x50   : > { %1134 = vmatpush3.xpose.msk.msra.mxu1 %vm401_vm2, %v398_v9  ;;  %1135 = vmatprep.mubr.msk.f32.mxu1 %vm1416_vm3, %v1415_v10  ;;  %v399_v28 = vld [vmem:[%s352_s8] sm:$0xff]  ;;  %v400_v29 = vld [vmem:[%s352_s8 + $0x8] sm:$0xff]  ;;  %vm938_vm6 = vcmask (!%p1107_p6), 261120  }
  0x51   : > { %1138 = vmatprep.subr.mxu0 %v1415_v10  ;;  %1143 = vmatprep.subr.mxu1 %v1415_v10  ;;  %v587_v47 = vld [vmem:[#allocation3 + $0x8] sm:$0xff]  ;;  %v601_v52 = vld [vmem:[#allocation4] sm:$0xff]  ;;  %v602_v55 = vld [vmem:[#allocation4 + $0x8] sm:$0xff] }
  0x52   : > { %1131 = vmatmul.mubr.msk.f32.vlgmr.msra.gmra.mrb[0].mxu0 %vm401_vm2, %v395_v11  ;;  %1270 = vset.pattern.permute.xlu1 %v1417_v19  ;;  %v789_v5 = vld [vmem:[%s1701_s3] sm:$0xff] (!%p1107_p6)  ;;  %v1108_v7 = vld [vmem:[%s1701_s3 + $0x8] sm:$0xff] (!%p1107_p6) }
  0x53   : > { %1136 = vmatmul.mubr.msk.f32.vlgmr.msra.gmra.mrb[0].mxu1 %vm401_vm2, %v396_v12  ;;  %1140 = vmatprep.mubr.msk.f32.mxu0 %vm1416_vm3, %v1415_v10 }
  0x54   : > { %1145 = vmatprep.mubr.msk.f32.mxu1 %vm1416_vm3, %v1415_v10  ;;  %1271 = vset.pattern.permute.xlu0 %v1417_v19 }
  0x55   : > { %1139 = vmatpush3.msra.mxu0 %v399_v28  ;;  %1144 = vmatpush3.msra.mxu1 %v400_v29 }
  0x56   : > { %1153 = vmatprep.subr.mxu0 (!%p1107_p6), %v1419_v4  ;;  %1148 = vmatprep.subr.mxu1 (!%p1107_p6), %v1419_v4 }
 0x125   : > { %v474_v13 = vpop.f32.mrb[0].mxu0 }
 0x126   : > { %v1132_v14 = vpop.f32.mrb[1].mxu0  ;;  %v556_v15 = vsel %vm401_vm2, %v474_v13, -inf  ;;  %v550_v16 = vpop.f32.mrb[0].mxu1 }
 0x127   : > { %557 = vmax.xlane.f32.xlu0 %v556_v15  ;;  %v1137_v17 = vpop.f32.mrb[1].mxu1  ;;  %v559_v18 = vsel %vm401_vm2, %v550_v16, -inf }
 0x12b   : > { %560 = vmax.xlane.f32.xlu0 %v559_v18 }
 0x1b4   : > { %v558_v21 = vpop.xlane.xlu0 %557 }
 0x1b5   : > { %v562_v22 = vmax.f32 %v554_v20, %v558_v21 }
 0x1b7   : > { %v564_v24 = vsub.f32 %v554_v20, %v562_v22  ;;  %765 = vst.msk [vmem:[#allocation2] sm:$0xff] %vm598_vm4, %v562_v22  ;;  %572 = vperm.xlu1 %1270, %v562_v22  }
 0x1b8   : > { %v561_v25 = vpop.xlane.xlu0 %560 }
 0x1b9   : > { %v563_v26 = vmax.f32 %v555_v23, %v561_v25  ;;  %v566_v41 = vmul.f32 1.442695, %v564_v24 }
 0x1bb   : > { %v565_v27 = vsub.f32 %v555_v23, %v563_v26  ;;  %766 = vst.msk [vmem:[#allocation2 + $0x8] sm:$0xff] %vm598_vm4, %v563_v26  ;;  %577 = vperm.xlu1 %1270, %v563_v26  }
 0x1bd   : > { %v568_v40 = vmul.f32 1.442695, %v565_v27 }
 0x236   : > { %v573_v30 = vpop.permute.xlu1 %572 }
 0x237   : > { %v580_v31 = vsub.f32 %v474_v13, %v573_v30 }
 0x239   : > { %v582_v32 = vmul.f32 1.442695, %v580_v31 }
 0x23a   : > { %v578_v33 = vpop.permute.xlu1 %577 }
 0x23b   : > { %1272 = vpow2.f32 %v582_v32  ;;  %v581_v34 = vsub.f32 %v550_v16, %v578_v33 }
 0x23d   : > { %v584_v35 = vmul.f32 1.442695, %v581_v34 }
 0x23f   : > { %1274 = vpow2.f32 %v584_v35 }
 0x240   : > { %1276 = vpow2.f32 %v568_v40 }
 0x241   : > { %1278 = vpow2.f32 %v566_v41 }
 0x245   : > { %v1273_v36 = vpop.eup %1272 }
 0x246   : > { %1141 = vmatmul.mubr.msk.f32.vlgmr.msra.gmra.mrb[2].mxu0 %vm401_vm2, %v1273_v36  ;;  %v590_v37 = vsel %vm401_vm2, %v1273_v36, 0.0 }
 0x247   : > { %591 = vadd.xlane.f32.xlu0 %v590_v37  ;;  %1154 = vmatpush3.msra.mxu0 (!%p1107_p6), %v789_v5 }
 0x248   : > { %1155 = vmatprep.mubr.msk.f32.mxu0 (!%p1107_p6), %vm1420_vm5, %v1419_v4 }
 0x249   : > { %v1275_v38 = vpop.eup %1274 }
 0x24a   : > { %1146 = vmatmul.mubr.msk.f32.vlgmr.msra.gmra.mrb[2].mxu1 %vm401_vm2, %v1275_v38  ;;  %v593_v39 = vsel %vm401_vm2, %v1275_v38, 0.0  ;;  %v1277_v42 = vpop.eup %1276 }
 0x24b   : > { %594 = vadd.xlane.f32.xlu1 %v593_v39  ;;  %v1279_v43 = vpop.eup %1278  ;;  %v589_v49 = vmul.f32 %v1277_v42, %v587_v47  ;;  %1150 = vmatprep.mubr.msk.f32.mxu1 (!%p1107_p6), %vm1420_vm5, %v1419_v4 }
 0x24c   : > { %v588_v45 = vmul.f32 %v1279_v43, %v586_v44  ;;  %1149 = vmatpush3.msra.mxu1 (!%p1107_p6), %v1108_v7 }
 0x25c   : > { %610 = vperm.xlu1 %1270, %v1277_v42  }
 0x25d   : > { %605 = vperm.xlu0 %1271, %v1279_v43  }
 0x261   : > { %1280 = vset.pattern.permute.xlu0 (!%p1107_p6), %v1418_v2 }
 0x2d4   : > { %v592_v46 = vpop.xlane.xlu0 %591 }
 0x2d5   : > { %v596_v48 = vadd.f32 %v592_v46, %v588_v45 }
 0x2d7   : > { %599 = vst.msk [vmem:[#allocation3] sm:$0xff] %vm598_vm4, %v596_v48 }
 0x2d8   : > { %v595_v50 = vpop.xlane.xlu1 %594 }
 0x2d9   : > { %v597_v51 = vadd.f32 %v595_v50, %v589_v49 }
 0x2db   : > { %600 = vst.msk [vmem:[#allocation3 + $0x8] sm:$0xff] %vm598_vm4, %v597_v51 }
 0x2dc   : > { %v606_v53 = vpop.permute.xlu0 %605  ;;  %v611_v56 = vpop.permute.xlu1 %610 }
 0x2dd   : > { %v613_v54 = vmul.f32 %v606_v53, %v601_v52  ;;  %v614_v60 = vmul.f32 %v611_v56, %v602_v55 }
 0x2de   : > { %v773_v0 = vld [vmem:[#allocation3] sm:$0xff] (!%p1107_p6) }
 0x2df   : > { %1281 = vrcp.f32 (!%p1107_p6), %v773_v0 }
 0x2e2   : > { %v774_v1 = vld [vmem:[#allocation3 + $0x8] sm:$0xff] (!%p1107_p6) }
 0x2e3   : > { %1283 = vrcp.f32 (!%p1107_p6), %v774_v1 }
 0x2e9   : > { %v1282_v3 = vpop.eup (!%p1107_p6), %1281 }
 0x2ea   : > { %779 = vperm.xlu0 (!%p1107_p6), %1280, %v1282_v3  }
 0x2ed   : > { %v1284_v6 = vpop.eup (!%p1107_p6), %1283 }
 0x2ee   : > { %784 = vperm.xlu0 (!%p1107_p6), %1280, %v1284_v6  }
 0x319   : > { %v684_v57 = vpop.f32.mrb[2].mxu0 }
 0x31a   : > { %v761_v58 = vadd.f32 %v684_v57, %v613_v54  ;;  %v1142_v59 = vpop.f32.mrb[3].mxu0  ;;  %770 = sbr.rel (%p1107_p6) target bundleno = 1095 (0x447), region = 158 }
 0x31c   : > { %763 = vst.msk [vmem:[#allocation4] sm:$0xff] %vm401_vm2, %v761_v58 }
 0x31d   : > { %v757_v61 = vpop.f32.mrb[2].mxu1 }
 0x31e   : > { %v762_v62 = vadd.f32 %v757_v61, %v614_v60  ;;  %v1147_v63 = vpop.f32.mrb[3].mxu1 }
 0x320   : > { %764 = vst.msk [vmem:[#allocation4 + $0x8] sm:$0xff] %vm401_vm2, %v762_v62 }
 0x323   : > { %v771_v8 = vld [vmem:[#allocation4] sm:$0xff] }
 0x327   : > { %v772_v11 = vld [vmem:[#allocation4 + $0x8] sm:$0xff] }
 0x369   : > { %v780_v9 = vpop.permute.xlu0 %779 }
 0x36a   : > { %v787_v10 = vmul.f32 %v780_v9, %v771_v8 }
 0x36c   : > { %1156 = vmatmul.mubr.msk.f32.vlgmr.msra.gmra.mrb[0].mxu0 %vm401_vm2, %v787_v10 }
 0x36d   : > { %v785_v12 = vpop.permute.xlu0 %784 }
 0x36e   : > { %v788_v13 = vmul.f32 %v785_v12, %v772_v11 }
 0x370   : > { %1151 = vmatmul.mubr.msk.f32.vlgmr.msra.gmra.mrb[0].mxu1 %vm401_vm2, %v788_v13 }
 0x43f   : > { %v934_v14 = vpop.f32.mrb[0].mxu0 }
 0x440   : > { %v1157_v15 = vpop.f32.mrb[1].mxu0 }
 0x443   : > { %v861_v16 = vpop.f32.mrb[0].mxu1 }
 0x444   : > { %v935_v17 = vadd.f32 %v934_v14, %v861_v16  ;;  %v1152_v18 = vpop.f32.mrb[1].mxu1 }
 0x446   : > { %939 = vst.msk [vmem:[%s1600_s12] sm:$0xff] %vm938_vm6, %v935_v17 }
 0x447 PF: > { %s1112_s9 = sshll.u32 %s1395_s22, 1  ;;  %s956_s30 = sshll.u32 %s1600_s12, 4  ;;  %s1636_s30 = int_to_ptr.vmem [resolvable:$true] %s956_s30 }
 0x448   : > { %s952_s5 = sadd.s32 %s1391_s21, %s1112_s9  ;;  %s941_s13 = scalar_lea.sflag [#allocation9], %s1591_s10 }
 0x449   : > { %s1113_s7 = sshll.u32 %s952_s5, 7  ;;  %s1285_s8 = scalar_lea.vmem %s1636_s30, 128 }
 0x44a   : > { %s954_s6 = scalar_lea.hbm %s1702_s4, %s1113_s7  ;;  %p1286_p7 = scmp.ne.s32.totalorder %s1636_s30, %s1285_s8 }
 0x44b   : > { %s1421_s16 = smov [#allocation8]  }
 0x44c   : > { %p1287_p8 = pnand %p1286_p7, %p1546_p11  ;;  %s1289_s22 = sshll.u32 %s1421_s16, 4  ;;  %s1290_s22 = int_to_ptr.vmem [resolvable:$false] %s1289_s22 }
 0x44d   : > { %s1291_s21 = scalar_lea.vmem %s1290_s22, 256  ;;  %p1292_p10 = scmp.lt.s32.totalorder %s1636_s30, %s1290_s22 }
 0x44e   : > { %p1288_p9 = pneg %p1287_p8  ;;  %p1293_p13 = scmp.lt.s32.totalorder %s1291_s21, %s1285_s8 }
 0x450   : > { %p1294_p0 = por %p1293_p13, %p1292_p10 }
 0x452   : > { %p1295_p2 = pnand %p1294_p0, %p1288_p9 }
 0x454   : > { %1298 = shalt.err (!%p1295_p2)
}
 0x455   : > { %s1299_s12 = scalar_lea.hbm %s954_s6, 128  ;;  %s1303_s20 = scalar_lea.hbm %s1702_s4, 512 }
 0x456   : > { %p1300_p1 = scmp.ne.s32.totalorder %s954_s6, %s1299_s12  ;;  %p1304_p5 = scmp.lt.u32.totalorder %s954_s6, %s1702_s4 }
 0x457   : > { %p1305_p6 = scmp.lt.u32.totalorder %s1303_s20, %s1299_s12  ;;  %p1307_p8 = scmp.lt.u32.totalorder %s1299_s12, %s954_s6 }
 0x458   : > { %p1301_p3 = pnand %p1300_p1, %p1546_p11 }
 0x459   : > { %p1306_p7 = por %p1305_p6, %p1304_p5 }
 0x45a   : > { %p1302_p4 = pneg %p1301_p3 }
 0x45b   : > { %p1308_p10 = por %p1307_p8, %p1306_p7 }
 0x45d   : > { %p1309_p9 = pnand %p1308_p10, %p1302_p4 }
 0x45f   : > { %1312 = shalt.err (!%p1309_p9)
}
 0x460   : > { %1159 = dma.vmem_to_hbm [thread:$0]  (%p1546_p11), %s1636_s30, 128, %s954_s6, %s941_s13  }
 0x461 PF: > { %s1719_s5 = sld [smem:[#allocation11_spill]]  ;;  %p1165_p13 = scmp.ge.s32.totalorder %s1411_s26, 2 }
 0x463   : > { %p1162_p0 = pnand %p1165_p13, %p1550_p12 }
 0x467   : > { %s968_s15 = sand.u32 1, %s1719_s5  }
 0x468   : > { %s969_s29 = scalar_lea.sflag [#allocation9], %s968_s15 }
 0x469   : > { %1362 = dma.done.wait (!%p1162_p0), %s969_s29, 128  }
 0x46a   : > { %1364 = vsyncadd (!%p1162_p0), %s969_s29, 4294967168  ;;  %s17_s26 = sadd.s32 1, %s1411_s26   ;;  %s1721_s21 = sld [smem:[#allocation12_spill]] }
 0x46b   : > { %p14_p2 = scmp.ge.s32.totalorder %s17_s26, 10   ;;  %s1722_s11 = sld [smem:[#allocation13_spill]] }
 0x46c   : > { %s1723_s24 = sld [smem:[#allocation14_spill]]  ;;  %s1724_s30 = sld [smem:[#allocation15_spill]] }
 0x46d   : > { %s1725_s15 = smov %s1379_s18  ;;  %s1726_s16 = smov %s1375_s17 }
 0x46e   : > { %s1727_s17 = smov %s1561_s28  ;;  %s1728_s18 = smov %s1383_s19 }
 0x46f   : > { %s1729_s19 = smov %s1558_s27  ;;  %s1730_s20 = smov %s1399_s23 }
 0x470   : > { %s1731_s22 = smov %s1407_s25  ;;  %16 = sbr.rel (!%p14_p2) target bundleno = 7 (0x7), region = 215 }
 0x471   : > { %s1732_s23 = smov %s1722_s11 }
 0x472   : > { %s1733_s25 = smov %s1724_s30 }
 0x477   :  { %974 = vsyncpa [#allocation9], 1 }
 0x478   :  { %976 = vsyncpa [#allocation9 + $0x1], 1 }

</bundles_post_ra>
